<compile_context>
chip_gen: v7x
topology: tpu7x:2x2x1
jax: 0.10.0
libtpu: 0.0.40
codegen_flags: <defaults>
</compile_context>

<pallas_src>
import jax
import jax.numpy as jnp
from jax.experimental import pallas as pl
from jax.experimental.pallas import tpu as pltpu

_LANE = 128


def _round_up(x, m):
    return (x + m - 1) // m * m


def _apply_node_func_kernel(h_ref, w1_ref, b1_ref, w2_ref, b2_ref, o_ref):
    """Fused ApplyNodeFunc forward for one row-tile of nodes.

    h_ref : (tm, Fin)        node features (row tile, bf16)
    w1_ref: (Fin, Fhid_p)    Linear1 weight with BN_mlp folded in (bf16)
    b1_ref: (1, Fhid_p)      Linear1 bias   with BN_mlp folded in (f32)
    w2_ref: (Fhid_p, Fout_p) Linear2 weight with BN_out folded in (bf16)
    b2_ref: (1, Fout_p)      Linear2 bias   with BN_out folded in (f32)
    o_ref : (tm, Fout_p)     output tile (f32)
    """
    h1 = jnp.dot(h_ref[...], w1_ref[...], preferred_element_type=jnp.float32)
    h1 = jnp.maximum(h1 + b1_ref[...], 0.0)        # relu(BN_mlp(Linear1(h))), f32
    h1 = h1.astype(w2_ref.dtype)                   # bf16 for the second MXU pass
    out = jnp.dot(h1, w2_ref[...], preferred_element_type=jnp.float32)
    out = jnp.maximum(out + b2_ref[...], 0.0)      # relu(BN_out(Linear2(h1))), f32
    o_ref[...] = out.astype(o_ref.dtype)


def _fold_bn_into_linear(w, b, bn_params, eps=1e-5):
    """Fold eval-mode BatchNorm1d into the preceding Linear (in f32).

    w: (in, out) [= torch weight transposed], b: (out,)
    bn_params: (gamma, beta, running_mean, running_var), each (out,)
    """
    gamma, beta, mean, var = bn_params
    scale = gamma / jnp.sqrt(var + eps)            # per-output-feature scale
    return w * scale[None, :], b * scale + (beta - mean * scale)


def _pad2(x, rows, cols):
    return jnp.pad(x, ((0, rows - x.shape[0]), (0, cols - x.shape[1])))


def prepare_params(params, *, eps=1e-5, compute_dtype=jnp.bfloat16):
    """One-time prep (hoisted out of the per-call path):
    fold eval-mode BN into the Linears in f32, pad the output feature dims to
    128 lanes (lane-dense stores / full MXU tiles), cast weights to bf16."""
    w1f, b1f = _fold_bn_into_linear(params["w1"], params["b1"], params["bn_mlp"], eps)
    w2f, b2f = _fold_bn_into_linear(params["w2"], params["b2"], params["bn_out"], eps)
    f_in, f_hid = w1f.shape
    f_out = w2f.shape[1]
    f_hid_p = _round_up(f_hid, _LANE)
    f_out_p = _round_up(f_out, _LANE)
    return {
        "w1": _pad2(w1f, f_in, f_hid_p).astype(compute_dtype),
        "b1": _pad2(b1f[None, :], 1, f_hid_p),                 # bias stays f32
        "w2": _pad2(w2f, f_hid_p, f_out_p).astype(compute_dtype),
        "b2": _pad2(b2f[None, :], 1, f_out_p),                 # bias stays f32
        "f_out": f_out,
    }


def _vmem_cap_bytes():
    """Per-TensorCore VMEM cap with headroom (v5e/v6e 128 MiB, v7x 64 MiB)."""
    try:
        info = pltpu.get_tpu_info()
        phys = int(getattr(info, "vmem_capacity_bytes", 64 << 20))
    except Exception:
        phys = 64 << 20            # conservative (v7x per-TC) default
    return max(16 << 20, phys * 3 // 4)


def _vmem_limit_bytes(tm, f_in, f_hid_p, f_out_p, single_buffer_weights):
    """Scoped-VMEM request from the actual working set, 1.5x margin,
    clamped to [4 MiB, chip cap]."""
    wb = 1 if single_buffer_weights else 2
    need = (2 * tm * f_in * 2                                  # h tile (bf16, 2 bufs)
            + 2 * tm * f_out_p * 4                             # out tile (f32, 2 bufs)
            + wb * (f_in * f_hid_p + f_hid_p * f_out_p) * 2    # weights (bf16)
            + wb * (f_hid_p + f_out_p) * 4                     # biases (f32)
            + tm * f_hid_p * (4 + 2)                           # h1 f32 acc + bf16 copy
            + tm * f_out_p * 4)                                # out f32 acc
    return min(max(int(1.5 * need), 4 << 20), _vmem_cap_bytes())


def _choose_tm(n, tm_max=1024):
    """Row tile: one grid step for small graphs (per-step overhead ~0.35us);
    cap at tm_max so large graphs keep a long 'parallel' axis for megacore."""
    if n <= tm_max:
        return max(8, _round_up(n, 8))
    return tm_max


def _build_call(n, f_in, f_hid_p, f_out_p, tm, single_buffer_weights):
    # Grid-invariant operands (weights/biases) are single-buffered when supported.
    wkw = {"pipeline_mode": pl.Buffered(1)} if single_buffer_weights else {}
    in_specs = [
        pl.BlockSpec((tm, f_in), lambda i: (i, 0)),                 # h row tile
        pl.BlockSpec((f_in, f_hid_p), lambda i: (0, 0), **wkw),     # w1 (resident)
        pl.BlockSpec((1, f_hid_p), lambda i: (0, 0), **wkw),        # b1
        pl.BlockSpec((f_hid_p, f_out_p), lambda i: (0, 0), **wkw),  # w2 (resident)
        pl.BlockSpec((1, f_out_p), lambda i: (0, 0), **wkw),        # b2
    ]
    return pl.pallas_call(
        _apply_node_func_kernel,
        out_shape=jax.ShapeDtypeStruct((n, f_out_p), jnp.float32),
        grid=(pl.cdiv(n, tm),),
        in_specs=in_specs,
        out_specs=pl.BlockSpec((tm, f_out_p), lambda i: (i, 0)),
        compiler_params=pltpu.CompilerParams(
            dimension_semantics=("parallel",),
            vmem_limit_bytes=_vmem_limit_bytes(
                tm, f_in, f_hid_p, f_out_p, single_buffer_weights),
        ),
    )


def apply_node_func_forward(h, prep, *, tm=None):
    """ApplyNodeFunc.forward (eval mode) as a single fused pallas_call.

    Returns the 128-lane-padded output (n, f_out_p); slice [:, :prep['f_out']]
    lazily in the consumer (keeps the kernel's store lane-dense and avoids an
    extra full read+write of the output)."""
    n, f_in = h.shape
    f_hid_p = prep["w1"].shape[1]
    f_out_p = prep["w2"].shape[1]
    if tm is None:
        tm = _choose_tm(n)
    h_c = h.astype(prep["w1"].dtype)   # bf16 activations: half the HBM bytes
    args = (h_c, prep["w1"], prep["b1"], prep["w2"], prep["b2"])
    try:
        return _build_call(n, f_in, f_hid_p, f_out_p, tm, True)(*args)
    except Exception:
        # Fallback for jax versions that reject single-buffered invariant
        # operands (pl.Buffered(1)); default double buffering is still correct.
        return _build_call(n, f_in, f_hid_p, f_out_p, tm, False)(*args)


def init_params(key, input_dim, hidden_dim, output_dim):
    """Deterministic parameters for mlp (2-layer GIN MLP) + ApplyNodeFunc BN."""
    k1, k2, k3, k4 = jax.random.split(key, 4)

    def linear(k, fi, fo):
        kw, kb = jax.random.split(k)
        s = 1.0 / jnp.sqrt(jnp.float32(fi))
        # torch Linear weight is (out, in); store transposed as (in, out).
        w = jax.random.uniform(kw, (fi, fo), jnp.float32, -s, s)
        b = jax.random.uniform(kb, (fo,), jnp.float32, -s, s)
        return w, b

    def bn(k, f):
        kg, kb, km, kv = jax.random.split(k, 4)
        gamma = jax.random.uniform(kg, (f,), jnp.float32, 0.5, 1.5)
        beta = 0.1 * jax.random.normal(kb, (f,), jnp.float32)
        mean = 0.1 * jax.random.normal(km, (f,), jnp.float32)
        var = jax.random.uniform(kv, (f,), jnp.float32, 0.5, 1.5)
        return gamma, beta, mean, var

    w1, b1 = linear(k1, input_dim, hidden_dim)
    w2, b2 = linear(k2, hidden_dim, output_dim)
    return {
        "w1": w1, "b1": b1, "bn_mlp": bn(k3, hidden_dim),
        "w2": w2, "b2": b2, "bn_out": bn(k4, output_dim),
    }


def _reference_forward(h, params, eps=1e-5):
    """Pure-JAX f32 reference mirroring the PyTorch forward (eval mode)."""
    def bn_apply(x, bnp):
        g, b, m, v = bnp
        return (x - m) / jnp.sqrt(v + eps) * g + b

    h1 = h @ params["w1"] + params["b1"]
    h1 = jnp.maximum(bn_apply(h1, params["bn_mlp"]), 0.0)
    out = h1 @ params["w2"] + params["b2"]
    return jnp.maximum(bn_apply(out, params["bn_out"]), 0.0)


if __name__ == "__main__":
    key = jax.random.PRNGKey(0)
    k_h, k_p = jax.random.split(key)

    # Small shapes consistent with the module (node-feature batch).
    n_nodes = 200
    input_dim, hidden_dim, output_dim = 16, 32, 32

    h = jax.random.normal(k_h, (n_nodes, input_dim), jnp.float32)
    params = init_params(k_p, input_dim, hidden_dim, output_dim)

    prep = prepare_params(params)            # one-time: BN fold + pad + bf16 cast
    out_padded = apply_node_func_forward(h, prep)
    jax.block_until_ready(out_padded)

    out = out_padded[:, :output_dim]         # consumer-side lazy column slice
    assert out.shape == (n_nodes, output_dim)

    ref = _reference_forward(h, params)
    max_err = float(jnp.max(jnp.abs(out - ref)))
    # bf16 matmul inputs with f32 accumulation -> looser tolerance than pure f32.
    assert max_err < 5e-2, max_err

    print("KERNEL_OK")
</pallas_src>

<mosaic_0001>
module attributes {stable_mosaic.version = 11 : i64} {
  func.func @_apply_node_func_kernel(%arg0: i32, %arg1: memref<200x16xbf16, #tpu.memory_space<vmem>>, %arg2: memref<16x128xbf16, #tpu.memory_space<vmem>>, %arg3: memref<1x128xf32, #tpu.memory_space<vmem>>, %arg4: memref<128x128xbf16, #tpu.memory_space<vmem>>, %arg5: memref<1x128xf32, #tpu.memory_space<vmem>>, %arg6: memref<200x128xf32, #tpu.memory_space<vmem>>) attributes {dimension_semantics = [#tpu.dimension_semantics<parallel>], iteration_bounds = array<i64: 1>, scalar_prefetch = 0 : i64, scratch_operands = 0 : i64, tpu.core_type = #tpu.core_type<tc>, window_params = [{transform_indices = @transform_0, window_bounds = array<i64: 200, 16>}, {pipeline_mode = #tpu.pipeline_mode<synchronous>, transform_indices = @transform_1, window_bounds = array<i64: 16, 128>}, {pipeline_mode = #tpu.pipeline_mode<synchronous>, transform_indices = @transform_2, window_bounds = array<i64: 1, 128>}, {pipeline_mode = #tpu.pipeline_mode<synchronous>, transform_indices = @transform_3, window_bounds = array<i64: 128, 128>}, {pipeline_mode = #tpu.pipeline_mode<synchronous>, transform_indices = @transform_4, window_bounds = array<i64: 1, 128>}, {transform_indices = @transform_5, window_bounds = array<i64: 200, 128>}]} {
    %c0 = arith.constant 0 : index
    %c0_0 = arith.constant 0 : index
    %0 = vector.load %arg1[%c0, %c0_0] : memref<200x16xbf16, #tpu.memory_space<vmem>>, vector<200x16xbf16>
    %c0_1 = arith.constant 0 : index
    %c0_2 = arith.constant 0 : index
    %1 = vector.load %arg2[%c0_1, %c0_2] : memref<16x128xbf16, #tpu.memory_space<vmem>>, vector<16x128xbf16>
    %cst = arith.constant dense<0.000000e+00> : vector<200x128xf32>
    %2 = tpu.matmul %0, %1, %cst {dimension_numbers = #tpu.dot_dimension_numbers<[1], [0], [0], [1], [0, 0, 1, 1], [], []>} : vector<200x16xbf16>, vector<16x128xbf16>, vector<200x128xf32> -> vector<200x128xf32>
    %c0_3 = arith.constant 0 : index
    %c0_4 = arith.constant 0 : index
    %3 = vector.load %arg3[%c0_3, %c0_4] : memref<1x128xf32, #tpu.memory_space<vmem>>, vector<1x128xf32>
    %4 = vector.broadcast %3 : vector<1x128xf32> to vector<200x128xf32>
    %5 = arith.addf %2, %4 : vector<200x128xf32>
    %cst_5 = arith.constant 0.000000e+00 : f32
    %6 = vector.broadcast %cst_5 : f32 to vector<200x128xf32>
    %7 = arith.maximumf %5, %6 : vector<200x128xf32>
    %8 = arith.truncf %7 : vector<200x128xf32> to vector<200x128xbf16>
    %c0_6 = arith.constant 0 : index
    %c0_7 = arith.constant 0 : index
    %9 = vector.load %arg4[%c0_6, %c0_7] : memref<128x128xbf16, #tpu.memory_space<vmem>>, vector<128x128xbf16>
    %cst_8 = arith.constant dense<0.000000e+00> : vector<200x128xf32>
    %10 = tpu.matmul %8, %9, %cst_8 {dimension_numbers = #tpu.dot_dimension_numbers<[1], [0], [0], [1], [0, 0, 1, 1], [], []>} : vector<200x128xbf16>, vector<128x128xbf16>, vector<200x128xf32> -> vector<200x128xf32>
    %c0_9 = arith.constant 0 : index
    %c0_10 = arith.constant 0 : index
    %11 = vector.load %arg5[%c0_9, %c0_10] : memref<1x128xf32, #tpu.memory_space<vmem>>, vector<1x128xf32>
    %12 = vector.broadcast %11 : vector<1x128xf32> to vector<200x128xf32>
    %13 = arith.addf %10, %12 : vector<200x128xf32>
    %cst_11 = arith.constant 0.000000e+00 : f32
    %14 = vector.broadcast %cst_11 : f32 to vector<200x128xf32>
    %15 = arith.maximumf %13, %14 : vector<200x128xf32>
    %c0_12 = arith.constant 0 : index
    %c0_13 = arith.constant 0 : index
    %16 = vector.load %arg6[%c0_12, %c0_13] : memref<200x128xf32, #tpu.memory_space<vmem>>, vector<200x128xf32>
    tpu.vector_store %arg6[%c0_12, %c0_13], %15 {strides = array<i32>} : memref<200x128xf32, #tpu.memory_space<vmem>>, vector<200x128xf32>,
    return
  }
  func.func @transform_0(%arg0: i32) -> (i32, i32) {
    %c0_i32 = arith.constant 0 : i32
    %c0_i32_0 = arith.constant 0 : i32
    return %arg0, %c0_i32 : i32, i32
  }
  func.func @transform_1(%arg0: i32) -> (i32, i32) {
    %c0_i32 = arith.constant 0 : i32
    %c0_i32_0 = arith.constant 0 : i32
    %c0_i32_1 = arith.constant 0 : i32
    return %c0_i32, %c0_i32_0 : i32, i32
  }
  func.func @transform_2(%arg0: i32) -> (i32, i32) {
    %c0_i32 = arith.constant 0 : i32
    %c0_i32_0 = arith.constant 0 : i32
    %c0_i32_1 = arith.constant 0 : i32
    return %c0_i32, %c0_i32_0 : i32, i32
  }
  func.func @transform_3(%arg0: i32) -> (i32, i32) {
    %c0_i32 = arith.constant 0 : i32
    %c0_i32_0 = arith.constant 0 : i32
    %c0_i32_1 = arith.constant 0 : i32
    return %c0_i32, %c0_i32_0 : i32, i32
  }
  func.func @transform_4(%arg0: i32) -> (i32, i32) {
    %c0_i32 = arith.constant 0 : i32
    %c0_i32_0 = arith.constant 0 : i32
    %c0_i32_1 = arith.constant 0 : i32
    return %c0_i32, %c0_i32_0 : i32, i32
  }
  func.func @transform_5(%arg0: i32) -> (i32, i32) {
    %c0_i32 = arith.constant 0 : i32
    %c0_i32_0 = arith.constant 0 : i32
    return %arg0, %c0_i32 : i32, i32
  }
}

module attributes {stable_mosaic.version = 11 : i64} {
  func.func @_apply_node_func_kernel(%arg0: i32, %arg1: memref<200x16xbf16, #tpu.memory_space<vmem>>, %arg2: memref<16x128xbf16, #tpu.memory_space<vmem>>, %arg3: memref<1x128xf32, #tpu.memory_space<vmem>>, %arg4: memref<128x128xbf16, #tpu.memory_space<vmem>>, %arg5: memref<1x128xf32, #tpu.memory_space<vmem>>, %arg6: memref<200x128xf32, #tpu.memory_space<vmem>>) attributes {dimension_semantics = [#tpu.dimension_semantics<parallel>], iteration_bounds = array<i64: 1>, scalar_prefetch = 0 : i64, scratch_operands = 0 : i64, tpu.core_type = #tpu.core_type<tc>, window_params = [{transform_indices = @transform_0, window_bounds = array<i64: 200, 16>}, {pipeline_mode = #tpu.pipeline_mode<synchronous>, transform_indices = @transform_1, window_bounds = array<i64: 16, 128>}, {pipeline_mode = #tpu.pipeline_mode<synchronous>, transform_indices = @transform_2, window_bounds = array<i64: 1, 128>}, {pipeline_mode = #tpu.pipeline_mode<synchronous>, transform_indices = @transform_3, window_bounds = array<i64: 128, 128>}, {pipeline_mode = #tpu.pipeline_mode<synchronous>, transform_indices = @transform_4, window_bounds = array<i64: 1, 128>}, {transform_indices = @transform_5, window_bounds = array<i64: 200, 128>}]} {
    %c0 = arith.constant 0 : index
    %c0_0 = arith.constant 0 : index
    %0 = vector.load %arg1[%c0, %c0_0] : memref<200x16xbf16, #tpu.memory_space<vmem>>, vector<200x16xbf16>
    %c0_1 = arith.constant 0 : index
    %c0_2 = arith.constant 0 : index
    %1 = vector.load %arg2[%c0_1, %c0_2] : memref<16x128xbf16, #tpu.memory_space<vmem>>, vector<16x128xbf16>
    %cst = arith.constant dense<0.000000e+00> : vector<200x128xf32>
    %2 = tpu.matmul %0, %1, %cst {dimension_numbers = #tpu.dot_dimension_numbers<[1], [0], [0], [1], [0, 0, 1, 1], [], []>} : vector<200x16xbf16>, vector<16x128xbf16>, vector<200x128xf32> -> vector<200x128xf32>
    %c0_3 = arith.constant 0 : index
    %c0_4 = arith.constant 0 : index
    %3 = vector.load %arg3[%c0_3, %c0_4] : memref<1x128xf32, #tpu.memory_space<vmem>>, vector<1x128xf32>
    %4 = vector.broadcast %3 : vector<1x128xf32> to vector<200x128xf32>
    %5 = arith.addf %2, %4 : vector<200x128xf32>
    %cst_5 = arith.constant 0.000000e+00 : f32
    %6 = vector.broadcast %cst_5 : f32 to vector<200x128xf32>
    %7 = arith.maximumf %5, %6 : vector<200x128xf32>
    %8 = arith.truncf %7 : vector<200x128xf32> to vector<200x128xbf16>
    %c0_6 = arith.constant 0 : index
    %c0_7 = arith.constant 0 : index
    %9 = vector.load %arg4[%c0_6, %c0_7] : memref<128x128xbf16, #tpu.memory_space<vmem>>, vector<128x128xbf16>
    %cst_8 = arith.constant dense<0.000000e+00> : vector<200x128xf32>
    %10 = tpu.matmul %8, %9, %cst_8 {dimension_numbers = #tpu.dot_dimension_numbers<[1], [0], [0], [1], [0, 0, 1, 1], [], []>} : vector<200x128xbf16>, vector<128x128xbf16>, vector<200x128xf32> -> vector<200x128xf32>
    %c0_9 = arith.constant 0 : index
    %c0_10 = arith.constant 0 : index
    %11 = vector.load %arg5[%c0_9, %c0_10] : memref<1x128xf32, #tpu.memory_space<vmem>>, vector<1x128xf32>
    %12 = vector.broadcast %11 : vector<1x128xf32> to vector<200x128xf32>
    %13 = arith.addf %10, %12 : vector<200x128xf32>
    %cst_11 = arith.constant 0.000000e+00 : f32
    %14 = vector.broadcast %cst_11 : f32 to vector<200x128xf32>
    %15 = arith.maximumf %13, %14 : vector<200x128xf32>
    %c0_12 = arith.constant 0 : index
    %c0_13 = arith.constant 0 : index
    %16 = vector.load %arg6[%c0_12, %c0_13] : memref<200x128xf32, #tpu.memory_space<vmem>>, vector<200x128xf32>
    tpu.vector_store %arg6[%c0_12, %c0_13], %15 {strides = array<i32>} : memref<200x128xf32, #tpu.memory_space<vmem>>, vector<200x128xf32>,
    return
  }
  func.func @transform_0(%arg0: i32) -> (i32, i32) {
    %c0_i32 = arith.constant 0 : i32
    %c0_i32_0 = arith.constant 0 : i32
    return %arg0, %c0_i32 : i32, i32
  }
  func.func @transform_1(%arg0: i32) -> (i32, i32) {
    %c0_i32 = arith.constant 0 : i32
    %c0_i32_0 = arith.constant 0 : i32
    %c0_i32_1 = arith.constant 0 : i32
    return %c0_i32, %c0_i32_0 : i32, i32
  }
  func.func @transform_2(%arg0: i32) -> (i32, i32) {
    %c0_i32 = arith.constant 0 : i32
    %c0_i32_0 = arith.constant 0 : i32
    %c0_i32_1 = arith.constant 0 : i32
    return %c0_i32, %c0_i32_0 : i32, i32
  }
  func.func @transform_3(%arg0: i32) -> (i32, i32) {
    %c0_i32 = arith.constant 0 : i32
    %c0_i32_0 = arith.constant 0 : i32
    %c0_i32_1 = arith.constant 0 : i32
    return %c0_i32, %c0_i32_0 : i32, i32
  }
  func.func @transform_4(%arg0: i32) -> (i32, i32) {
    %c0_i32 = arith.constant 0 : i32
    %c0_i32_0 = arith.constant 0 : i32
    %c0_i32_1 = arith.constant 0 : i32
    return %c0_i32, %c0_i32_0 : i32, i32
  }
  func.func @transform_5(%arg0: i32) -> (i32, i32) {
    %c0_i32 = arith.constant 0 : i32
    %c0_i32_0 = arith.constant 0 : i32
    return %arg0, %c0_i32 : i32, i32
  }
}

</mosaic_0001>

<bundles_post_ra>
// kernel: tpu_custom_call.1
= control target key start
LH: loop header
LB: loop body
LE: loop exit
PB: predicated region body
PF: predicated region fallthrough
CT: control target
= control target key end

     0   :  { %v873_v1 = vmov 0.0   ;;  %vm874_vm0 = vmmov 0   ;;  %vm125_vm1 = vcmask 130048   ;;  %s1128_s0 = inlined_call_operand.vmem [shape: bf16[200,16], index: 0, kind: input, shape index: {}]   ;;  %s1129_s1 = inlined_call_operand.vmem [shape: bf16[16,128], index: 1, kind: input, shape index: {}]   ;;  %s1130_s2 = inlined_call_operand.vmem [shape: f32[1,128], index: 2, kind: input, shape index: {}]   ;;  %s1131_s3 = inlined_call_operand.vmem [shape: bf16[128,128], index: 3, kind: input, shape index: {}]   ;;  %s1132_s4 = inlined_call_operand.vmem [shape: f32[1,128], index: 4, kind: input, shape index: {}]   ;;  %s1133_s5 = inlined_call_operand.hbm [shape: f32[200,128], index: 5, kind: output, shape index: {}]  }
   0x1   :  { %v827_v0 = vld [vmem:[%s1129_s1] sm:$0xff]   ;;  %684 = vmatprep.subr.bf16.mxu0 %v873_v1  ;;  %806 = vmatprep.subr.bf16.mxu1 %v873_v1  ;;  %v829_v3 = vld [vmem:[%s1128_s0 + $0x8] sm:$0xff]   ;;  %v830_v6 = vld [vmem:[%s1128_s0 + $0x10] sm:$0xff]  }
   0x2   :  { %v828_v2 = vld [vmem:[%s1128_s0] sm:$0xff]   ;;  %685 = vmatpush3.bf16.msra.mxu0 %v827_v0  ;;  %686 = vmatprep.mubr.msk.bf16.mxu0 %vm874_vm0, %v873_v1  ;;  %v842_v5 = vld [vmem:[%s1131_s3 + $0x8] sm:$0xff]   ;;  %v843_v7 = vld [vmem:[%s1131_s3 + $0x10] sm:$0xff]  }
   0x3   :  { %738 = vmatprep.subr.bf16.mxu0 %v873_v1  ;;  %758 = vmatprep.mubr.msk.bf16.mxu1 %vm874_vm0, %v873_v1  ;;  %v841_v4 = vld [vmem:[%s1131_s3] sm:$0xff]  }
   0x4   :  { %814 = vmatpush3.bf16.msra.mxu1 %v841_v4 }
   0x5   :  { %687 = vmatmul.mubr.msk.bf16.vlgmr.msra.gmra.mrb[0].mxu0 %vm125_vm1, %v828_v2  ;;  %807 = vmatprep.subr.bf16.mxu1 %v873_v1 }
   0x6   :  { %690 = vmatprep.mubr.msk.bf16.mxu0 %vm874_vm0, %v873_v1  ;;  %739 = vmatpush3.bf16.msra.mxu0 %v841_v4 }
   0x7   :  { %740 = vmatprep.subr.bf16.mxu0 %v873_v1 }
   0x8   :  { %815 = vmatpush3.bf16.msra.mxu1 %v842_v5 }
   0xa   :  { %741 = vmatpush3.bf16.msra.mxu0 %v842_v5 }
   0xb   :  { %742 = vmatprep.subr.bf16.mxu0 %v873_v1 }
   0xd   :  { %691 = vmatmul.mubr.msk.bf16.gmra.mrb[4].mxu0 %vm125_vm1, %v829_v3 }
   0xe   :  { %694 = vmatprep.mubr.msk.bf16.mxu0 %vm874_vm0, %v873_v1 }
  0x15   :  { %695 = vmatmul.mubr.msk.bf16.gmra.mrb[8].mxu0 %vm125_vm1, %v830_v6 }
  0x16   :  { %10 = vsyncpa [#allocation3], 0  ;;  %698 = vmatprep.mubr.msk.bf16.mxu0 %vm874_vm0, %v873_v1  ;;  %808 = vmatprep.subr.bf16.mxu1 %v873_v1  ;;  %v844_v8 = vld [vmem:[%s1131_s3 + $0x18] sm:$0xff]   ;;  %v845_v10 = vld [vmem:[%s1131_s3 + $0x20] sm:$0xff]  }
  0x17   :  { %743 = vmatpush3.bf16.msra.mxu0 %v843_v7  ;;  %816 = vmatpush3.bf16.msra.mxu1 %v843_v7  ;;  %v831_v9 = vld [vmem:[%s1128_s0 + $0x18] sm:$0xff]   ;;  %v846_v11 = vld [vmem:[%s1131_s3 + $0x28] sm:$0xff]   ;;  %v832_v12 = vld [vmem:[%s1128_s0 + $0x20] sm:$0xff]  }
  0x18   :  { %744 = vmatprep.subr.bf16.mxu0 %v873_v1  ;;  %809 = vmatprep.subr.bf16.mxu1 %v873_v1  ;;  %v833_v13 = vld [vmem:[%s1128_s0 + $0x28] sm:$0xff]   ;;  %v834_v14 = vld [vmem:[%s1128_s0 + $0x30] sm:$0xff]   ;;  %v835_v15 = vld [vmem:[%s1128_s0 + $0x38] sm:$0xff]  }
  0x19   :  { %v836_v16 = vld [vmem:[%s1128_s0 + $0x40] sm:$0xff]   ;;  %v837_v17 = vld [vmem:[%s1128_s0 + $0x48] sm:$0xff]   ;;  %v838_v18 = vld [vmem:[%s1128_s0 + $0x50] sm:$0xff]  }
  0x1a   :  { %v847_v19 = vld [vmem:[%s1131_s3 + $0x30] sm:$0xff]   ;;  %v839_v20 = vld [vmem:[%s1128_s0 + $0x58] sm:$0xff]   ;;  %v840_v22 = vld [vmem:[%s1128_s0 + $0x60] ss:$0 sps:$4 sm:$0xff]  }
  0x1b   :  { %745 = vmatpush3.bf16.msra.mxu0 %v844_v8  ;;  %817 = vmatpush3.bf16.msra.mxu1 %v844_v8  ;;  %v848_v21 = vld [vmem:[%s1131_s3 + $0x38] sm:$0xff]   ;;  %v1037_v23 = vld [vmem:[%s1130_s2] ss:$0 sm:$0xff]  ;;  %s875_s3 = smov [#allocation2]  }
  0x1c   :  { %746 = vmatprep.subr.bf16.mxu0 %v873_v1  ;;  %810 = vmatprep.subr.bf16.mxu1 %v873_v1 }
  0x1d   :  { %699 = vmatmul.mubr.msk.bf16.gmra.mrb[12].mxu0 %vm125_vm1, %v831_v9 }
  0x1e   :  { %702 = vmatprep.mubr.msk.bf16.mxu0 %vm874_vm0, %v873_v1 }
  0x1f   :  { %747 = vmatpush3.bf16.msra.mxu0 %v845_v10  ;;  %818 = vmatpush3.bf16.msra.mxu1 %v845_v10 }
  0x20   :  { %748 = vmatprep.subr.bf16.mxu0 %v873_v1  ;;  %811 = vmatprep.subr.bf16.mxu1 %v873_v1 }
  0x23   :  { %749 = vmatpush3.bf16.msra.mxu0 %v846_v11  ;;  %819 = vmatpush3.bf16.msra.mxu1 %v846_v11 }
  0x24   :  { %750 = vmatprep.subr.bf16.mxu0 %v873_v1  ;;  %812 = vmatprep.subr.bf16.mxu1 %v873_v1 }
  0x25   :  { %703 = vmatmul.mubr.msk.bf16.gmra.mrb[16].mxu0 %vm125_vm1, %v832_v12 }
  0x26   :  { %706 = vmatprep.mubr.msk.bf16.mxu0 %vm874_vm0, %v873_v1 }
  0x27   :  { %751 = vmatpush3.bf16.msra.mxu0 %v847_v19  ;;  %820 = vmatpush3.bf16.msra.mxu1 %v847_v19 }
  0x28   :  { %752 = vmatprep.subr.bf16.mxu0 %v873_v1  ;;  %813 = vmatprep.subr.bf16.mxu1 %v873_v1 }
  0x2b   :  { %753 = vmatpush3.bf16.msra.mxu0 %v848_v21  ;;  %821 = vmatpush3.bf16.msra.mxu1 %v848_v21 }
  0x2d   :  { %707 = vmatmul.mubr.msk.bf16.gmra.mrb[20].mxu0 %vm125_vm1, %v833_v13 }
  0x2e   :  { %710 = vmatprep.mubr.msk.bf16.mxu0 %vm874_vm0, %v873_v1 }
  0x35   :  { %711 = vmatmul.mubr.msk.bf16.gmra.mrb[24].mxu0 %vm125_vm1, %v834_v14 }
  0x36   :  { %714 = vmatprep.mubr.msk.bf16.mxu0 %vm874_vm0, %v873_v1 }
  0x3d   :  { %715 = vmatmul.mubr.msk.bf16.gmra.mrb[28].mxu0 %vm125_vm1, %v835_v15 }
  0x3e   :  { %718 = vmatprep.mubr.msk.bf16.mxu0 %vm874_vm0, %v873_v1 }
  0x45   :  { %719 = vmatmul.mubr.msk.bf16.gmra.mrb[32].mxu0 %vm125_vm1, %v836_v16 }
  0x46   :  { %722 = vmatprep.mubr.msk.bf16.mxu0 %vm874_vm0, %v873_v1 }
  0x4d   :  { %723 = vmatmul.mubr.msk.bf16.gmra.mrb[36].mxu0 %vm125_vm1, %v837_v17 }
  0x4e   :  { %726 = vmatprep.mubr.msk.bf16.mxu0 %vm874_vm0, %v873_v1 }
  0x55   :  { %727 = vmatmul.mubr.msk.bf16.gmra.mrb[40].mxu0 %vm125_vm1, %v838_v18 }
  0x56   :  { %730 = vmatprep.mubr.msk.bf16.mxu0 %vm874_vm0, %v873_v1 }
  0x5d   :  { %731 = vmatmul.mubr.msk.bf16.gmra.mrb[44].mxu0 %vm125_vm1, %v839_v20 }
  0x5e   :  { %734 = vmatprep.mubr.msk.bf16.mxu0 %vm874_vm0, %v873_v1 }
  0x65   :  { %735 = vmatmul.mubr.msk.bf16.gmra.mrb[48].mxu0 %vm125_vm1, %v840_v22 }
  0x66   :  { %754 = vmatprep.mubr.msk.bf16.mxu0 %vm874_vm0, %v873_v1 }
  0xd8   :  { %v199_v24 = vpop.f32.mrb[0].mxu0 }
  0xd9   :  { %v200_v25 = vadd.f32 %v1037_v23, %v199_v24  ;;  %v688_v26 = vpop.f32.mrb[1].mxu0 }
  0xda   :  { %v202_v27 = vpop.f32.mrb[2].mxu0 }
  0xdb   :  { %v203_v28 = vadd.f32 %v1037_v23, %v202_v27  ;;  %v689_v29 = vpop.f32.mrb[3].mxu0  ;;  %v301_v30 = vmax.f32 %v200_v25, 0.0 }
  0xdd   :  { %v302_v31 = vmax.f32 %v203_v28, 0.0 }
  0xdf   :  { %v326_v32 = vpack.c.bf16 %v302_v31, %v301_v30 }
  0xe0   :  { %v207_v33 = vpop.f32.mrb[4].mxu0 }
  0xe1   :  { %v208_v34 = vadd.f32 %v1037_v23, %v207_v33  ;;  %v692_v35 = vpop.f32.mrb[5].mxu0  ;;  %755 = vmatmul.mubr.bf16.vlgmr.msra.gmra.mrb[52].mxu0 %v326_v32 }
  0xe2   :  { %v210_v36 = vpop.f32.mrb[6].mxu0 }
  0xe3   :  { %v211_v37 = vadd.f32 %v1037_v23, %v210_v36  ;;  %v693_v38 = vpop.f32.mrb[7].mxu0  ;;  %v303_v39 = vmax.f32 %v208_v34, 0.0 }
  0xe5   :  { %v304_v40 = vmax.f32 %v211_v37, 0.0 }
  0xe7   :  { %v327_v41 = vpack.c.bf16 %v304_v40, %v303_v39 }
  0xe8   :  { %v215_v42 = vpop.f32.mrb[8].mxu0 }
  0xe9   :  { %v216_v43 = vadd.f32 %v1037_v23, %v215_v42  ;;  %v696_v44 = vpop.f32.mrb[9].mxu0  ;;  %759 = vmatmul.mubr.bf16.vlgmr.msra.gmra.mrb[0].mxu1 %v327_v41 }
  0xea   :  { %v218_v45 = vpop.f32.mrb[10].mxu0  ;;  %762 = vmatprep.mubr.msk.bf16.mxu1 %vm874_vm0, %v873_v1 }
  0xeb   :  { %v219_v46 = vadd.f32 %v1037_v23, %v218_v45  ;;  %v697_v47 = vpop.f32.mrb[11].mxu0  ;;  %v305_v48 = vmax.f32 %v216_v43, 0.0 }
  0xed   :  { %v306_v49 = vmax.f32 %v219_v46, 0.0 }
  0xef   :  { %v328_v50 = vpack.c.bf16 %v306_v49, %v305_v48 }
  0xf0   :  { %v223_v51 = vpop.f32.mrb[12].mxu0 }
  0xf1   :  { %v224_v52 = vadd.f32 %v1037_v23, %v223_v51  ;;  %v700_v53 = vpop.f32.mrb[13].mxu0  ;;  %763 = vmatmul.mubr.bf16.gmra.mrb[4].mxu1 %v328_v50 }
  0xf2   :  { %v226_v54 = vpop.f32.mrb[14].mxu0  ;;  %766 = vmatprep.mubr.msk.bf16.mxu1 %vm874_vm0, %v873_v1 }
  0xf3   :  { %v227_v55 = vadd.f32 %v1037_v23, %v226_v54  ;;  %v701_v56 = vpop.f32.mrb[15].mxu0  ;;  %v307_v57 = vmax.f32 %v224_v52, 0.0 }
  0xf5   :  { %v308_v58 = vmax.f32 %v227_v55, 0.0 }
  0xf7   :  { %v329_v59 = vpack.c.bf16 %v308_v58, %v307_v57 }
  0xf8   :  { %v231_v60 = vpop.f32.mrb[16].mxu0 }
  0xf9   :  { %v232_v61 = vadd.f32 %v1037_v23, %v231_v60  ;;  %v704_v62 = vpop.f32.mrb[17].mxu0  ;;  %767 = vmatmul.mubr.bf16.gmra.mrb[8].mxu1 %v329_v59 }
  0xfa   :  { %v234_v63 = vpop.f32.mrb[18].mxu0  ;;  %770 = vmatprep.mubr.msk.bf16.mxu1 %vm874_vm0, %v873_v1 }
  0xfb   :  { %v235_v0 = vadd.f32 %v1037_v23, %v234_v63  ;;  %v705_v2 = vpop.f32.mrb[19].mxu0  ;;  %v309_v3 = vmax.f32 %v232_v61, 0.0 }
  0xfd   :  { %v310_v4 = vmax.f32 %v235_v0, 0.0 }
  0xff   :  { %v330_v5 = vpack.c.bf16 %v310_v4, %v309_v3 }
 0x100   :  { %v239_v6 = vpop.f32.mrb[20].mxu0 }
 0x101   :  { %v240_v7 = vadd.f32 %v1037_v23, %v239_v6  ;;  %v708_v8 = vpop.f32.mrb[21].mxu0  ;;  %771 = vmatmul.mubr.bf16.gmra.mrb[12].mxu1 %v330_v5 }
 0x102   :  { %v242_v9 = vpop.f32.mrb[22].mxu0  ;;  %774 = vmatprep.mubr.msk.bf16.mxu1 %vm874_vm0, %v873_v1 }
 0x103   :  { %v243_v10 = vadd.f32 %v1037_v23, %v242_v9  ;;  %v709_v11 = vpop.f32.mrb[23].mxu0  ;;  %v311_v12 = vmax.f32 %v240_v7, 0.0 }
 0x105   :  { %v312_v13 = vmax.f32 %v243_v10, 0.0 }
 0x107   :  { %v331_v14 = vpack.c.bf16 %v312_v13, %v311_v12 }
 0x108   :  { %v247_v15 = vpop.f32.mrb[24].mxu0 }
 0x109   :  { %v248_v16 = vadd.f32 %v1037_v23, %v247_v15  ;;  %v712_v17 = vpop.f32.mrb[25].mxu0  ;;  %775 = vmatmul.mubr.bf16.gmra.mrb[16].mxu1 %v331_v14  ;;  %v1089_v14 = vld [vmem:[%s1132_s4] ss:$0 sm:$0xff]  ;;  %s601_s4 = sshll.u32 %s875_s3, 4  ;;  %s602_s4 = int_to_ptr.vmem [resolvable:$true] %s601_s4 }
 0x10a   :  { %v250_v18 = vpop.f32.mrb[26].mxu0  ;;  %778 = vmatprep.mubr.msk.bf16.mxu1 %vm874_vm0, %v873_v1  ;;  %s849_s12 = scalar_lea.vmem %s602_s4, 3200  ;;  %p854_p1 = scmp.lt.s32.totalorder %s602_s4, %s602_s4 }
 0x10b   :  { %v251_v19 = vadd.f32 %v1037_v23, %v250_v18  ;;  %v713_v20 = vpop.f32.mrb[27].mxu0  ;;  %v313_v21 = vmax.f32 %v248_v16, 0.0  ;;  %p850_p0 = scmp.ne.s32.totalorder %s602_s4, %s849_s12  ;;  %p855_p2 = scmp.lt.s32.totalorder %s849_s12, %s849_s12 }
 0x10d   :  { %v314_v22 = vmax.f32 %v251_v19, 0.0  ;;  %p856_p3 = por %p855_p2, %p854_p1 }
 0x10f   :  { %v332_v24 = vpack.c.bf16 %v314_v22, %v313_v21  ;;  %p857_p4 = pnand %p856_p3, %p850_p0 }
 0x110   :  { %v255_v25 = vpop.f32.mrb[28].mxu0 }
 0x111   :  { %v256_v26 = vadd.f32 %v1037_v23, %v255_v25  ;;  %v716_v27 = vpop.f32.mrb[29].mxu0  ;;  %779 = vmatmul.mubr.bf16.gmra.mrb[20].mxu1 %v332_v24 }
 0x112   :  { %v258_v28 = vpop.f32.mrb[30].mxu0  ;;  %782 = vmatprep.mubr.msk.bf16.mxu1 %vm874_vm0, %v873_v1 }
 0x113   :  { %v259_v29 = vadd.f32 %v1037_v23, %v258_v28  ;;  %v717_v30 = vpop.f32.mrb[31].mxu0  ;;  %v315_v31 = vmax.f32 %v256_v26, 0.0 }
 0x115   :  { %v316_v32 = vmax.f32 %v259_v29, 0.0 }
 0x117   :  { %v333_v33 = vpack.c.bf16 %v316_v32, %v315_v31 }
 0x118   :  { %v263_v34 = vpop.f32.mrb[32].mxu0 }
 0x119   :  { %v264_v35 = vadd.f32 %v1037_v23, %v263_v34  ;;  %v720_v36 = vpop.f32.mrb[33].mxu0  ;;  %783 = vmatmul.mubr.bf16.gmra.mrb[24].mxu1 %v333_v33 }
 0x11a   :  { %v266_v37 = vpop.f32.mrb[34].mxu0  ;;  %786 = vmatprep.mubr.msk.bf16.mxu1 %vm874_vm0, %v873_v1 }
 0x11b   :  { %v267_v38 = vadd.f32 %v1037_v23, %v266_v37  ;;  %v721_v39 = vpop.f32.mrb[35].mxu0  ;;  %v317_v40 = vmax.f32 %v264_v35, 0.0 }
 0x11d   :  { %v318_v41 = vmax.f32 %v267_v38, 0.0 }
 0x11f   :  { %v334_v42 = vpack.c.bf16 %v318_v41, %v317_v40 }
 0x120   :  { %v271_v43 = vpop.f32.mrb[36].mxu0 }
 0x121   :  { %v272_v44 = vadd.f32 %v1037_v23, %v271_v43  ;;  %v724_v45 = vpop.f32.mrb[37].mxu0  ;;  %787 = vmatmul.mubr.bf16.gmra.mrb[28].mxu1 %v334_v42 }
 0x122   :  { %v274_v46 = vpop.f32.mrb[38].mxu0  ;;  %790 = vmatprep.mubr.msk.bf16.mxu1 %vm874_vm0, %v873_v1 }
 0x123   :  { %v275_v47 = vadd.f32 %v1037_v23, %v274_v46  ;;  %v725_v48 = vpop.f32.mrb[39].mxu0  ;;  %v319_v49 = vmax.f32 %v272_v44, 0.0 }
 0x125   :  { %v320_v50 = vmax.f32 %v275_v47, 0.0 }
 0x127   :  { %v335_v51 = vpack.c.bf16 %v320_v50, %v319_v49 }
 0x128   :  { %v279_v52 = vpop.f32.mrb[40].mxu0 }
 0x129   :  { %v280_v53 = vadd.f32 %v1037_v23, %v279_v52  ;;  %v728_v54 = vpop.f32.mrb[41].mxu0  ;;  %791 = vmatmul.mubr.bf16.gmra.mrb[32].mxu1 %v335_v51 }
 0x12a   :  { %v282_v55 = vpop.f32.mrb[42].mxu0  ;;  %794 = vmatprep.mubr.msk.bf16.mxu1 %vm874_vm0, %v873_v1 }
 0x12b   :  { %v283_v56 = vadd.f32 %v1037_v23, %v282_v55  ;;  %v729_v57 = vpop.f32.mrb[43].mxu0  ;;  %v321_v58 = vmax.f32 %v280_v53, 0.0 }
 0x12d   :  { %v322_v59 = vmax.f32 %v283_v56, 0.0 }
 0x12f   :  { %v336_v60 = vpack.c.bf16 %v322_v59, %v321_v58 }
 0x130   :  { %v287_v61 = vpop.f32.mrb[44].mxu0 }
 0x131   :  { %v288_v62 = vadd.f32 %v1037_v23, %v287_v61  ;;  %v732_v63 = vpop.f32.mrb[45].mxu0  ;;  %795 = vmatmul.mubr.bf16.gmra.mrb[36].mxu1 %v336_v60 }
 0x132   :  { %v290_v0 = vpop.f32.mrb[46].mxu0  ;;  %798 = vmatprep.mubr.msk.bf16.mxu1 %vm874_vm0, %v873_v1 }
 0x133   :  { %v291_v2 = vadd.f32 %v1037_v23, %v290_v0  ;;  %v733_v3 = vpop.f32.mrb[47].mxu0  ;;  %v323_v4 = vmax.f32 %v288_v62, 0.0 }
 0x135   :  { %v324_v5 = vmax.f32 %v291_v2, 0.0 }
 0x137   :  { %v337_v6 = vpack.c.bf16 %v324_v5, %v323_v4 }
 0x138   :  { %v295_v7 = vpop.f32.mrb[48].mxu0 }
 0x139   :  { %v296_v8 = vadd.f32 %v1037_v23, %v295_v7  ;;  %v736_v9 = vpop.f32.mrb[49].mxu0  ;;  %799 = vmatmul.mubr.bf16.gmra.mrb[40].mxu1 %v337_v6 }
 0x13a   :  { %v298_v10 = vpop.f32.mrb[50].mxu0  ;;  %802 = vmatprep.mubr.msk.bf16.mxu1 %vm874_vm0, %v873_v1 }
 0x13b   :  { %v325_v11 = vmax.f32 %v296_v8, 0.0  ;;  %v737_v12 = vpop.f32.mrb[51].mxu0 }
 0x13d   :  { %v338_v13 = vpack.c.bf16 %v325_v11, %v325_v11 }
 0x141   :  { %803 = vmatmul.mubr.bf16.gmra.mrb[44].mxu1 %v338_v13 }
 0x1b4   :  { %v444_v15 = vpop.f32.mrb[52].mxu0 }
 0x1b5   :  { %v445_v16 = vadd.f32 %v1089_v14, %v444_v15  ;;  %v756_v17 = vpop.f32.mrb[53].mxu0 }
 0x1b6   :  { %v447_v23 = vpop.f32.mrb[54].mxu0 }
 0x1b7   :  { %v546_v18 = vmax.f32 %v445_v16, 0.0  ;;  %v448_v19 = vadd.f32 %v1089_v14, %v447_v23  ;;  %v757_v20 = vpop.f32.mrb[55].mxu0 }
 0x1b9   :  { %571 = vst [vmem:[#allocation2] sm:$0xff] %v546_v18  ;;  %v547_v1 = vmax.f32 %v448_v19, 0.0 }
 0x1bb   :  { %572 = vst [vmem:[#allocation2 + $0x8] sm:$0xff] %v547_v1 }
 0x1bc   :  { %v452_v21 = vpop.f32.mrb[0].mxu1 }
 0x1bd   :  { %v453_v22 = vadd.f32 %v1089_v14, %v452_v21  ;;  %v760_v24 = vpop.f32.mrb[1].mxu1 }
 0x1be   :  { %v455_v25 = vpop.f32.mrb[2].mxu1 }
 0x1bf   :  { %v548_v26 = vmax.f32 %v453_v22, 0.0  ;;  %v456_v27 = vadd.f32 %v1089_v14, %v455_v25  ;;  %v761_v28 = vpop.f32.mrb[3].mxu1 }
 0x1c1   :  { %573 = vst [vmem:[#allocation2 + $0x10] sm:$0xff] %v548_v26  ;;  %v549_v29 = vmax.f32 %v456_v27, 0.0 }
 0x1c3   :  { %574 = vst [vmem:[#allocation2 + $0x18] sm:$0xff] %v549_v29 }
 0x1c4   :  { %v460_v30 = vpop.f32.mrb[4].mxu1 }
 0x1c5   :  { %v461_v31 = vadd.f32 %v1089_v14, %v460_v30  ;;  %v764_v32 = vpop.f32.mrb[5].mxu1 }
 0x1c6   :  { %v463_v33 = vpop.f32.mrb[6].mxu1 }
 0x1c7   :  { %v550_v34 = vmax.f32 %v461_v31, 0.0  ;;  %v464_v35 = vadd.f32 %v1089_v14, %v463_v33  ;;  %v765_v36 = vpop.f32.mrb[7].mxu1 }
 0x1c9   :  { %575 = vst [vmem:[#allocation2 + $0x20] sm:$0xff] %v550_v34  ;;  %v551_v37 = vmax.f32 %v464_v35, 0.0 }
 0x1cb   :  { %576 = vst [vmem:[#allocation2 + $0x28] sm:$0xff] %v551_v37 }
 0x1cc   :  { %v468_v38 = vpop.f32.mrb[8].mxu1 }
 0x1cd   :  { %v469_v39 = vadd.f32 %v1089_v14, %v468_v38  ;;  %v768_v40 = vpop.f32.mrb[9].mxu1 }
 0x1ce   :  { %v471_v41 = vpop.f32.mrb[10].mxu1 }
 0x1cf   :  { %v552_v42 = vmax.f32 %v469_v39, 0.0  ;;  %v472_v43 = vadd.f32 %v1089_v14, %v471_v41  ;;  %v769_v44 = vpop.f32.mrb[11].mxu1 }
 0x1d1   :  { %577 = vst [vmem:[#allocation2 + $0x30] sm:$0xff] %v552_v42  ;;  %v553_v45 = vmax.f32 %v472_v43, 0.0 }
 0x1d3   :  { %578 = vst [vmem:[#allocation2 + $0x38] sm:$0xff] %v553_v45 }
 0x1d4   :  { %v476_v46 = vpop.f32.mrb[12].mxu1 }
 0x1d5   :  { %v477_v47 = vadd.f32 %v1089_v14, %v476_v46  ;;  %v772_v48 = vpop.f32.mrb[13].mxu1 }
 0x1d6   :  { %v479_v49 = vpop.f32.mrb[14].mxu1 }
 0x1d7   :  { %v554_v50 = vmax.f32 %v477_v47, 0.0  ;;  %v480_v51 = vadd.f32 %v1089_v14, %v479_v49  ;;  %v773_v52 = vpop.f32.mrb[15].mxu1 }
 0x1d9   :  { %579 = vst [vmem:[#allocation2 + $0x40] sm:$0xff] %v554_v50  ;;  %v555_v53 = vmax.f32 %v480_v51, 0.0 }
 0x1db   :  { %580 = vst [vmem:[#allocation2 + $0x48] sm:$0xff] %v555_v53 }
 0x1dc   :  { %v484_v54 = vpop.f32.mrb[16].mxu1 }
 0x1dd   :  { %v485_v55 = vadd.f32 %v1089_v14, %v484_v54  ;;  %v776_v56 = vpop.f32.mrb[17].mxu1 }
 0x1de   :  { %v487_v57 = vpop.f32.mrb[18].mxu1 }
 0x1df   :  { %v556_v58 = vmax.f32 %v485_v55, 0.0  ;;  %v488_v59 = vadd.f32 %v1089_v14, %v487_v57  ;;  %v777_v60 = vpop.f32.mrb[19].mxu1 }
 0x1e1   :  { %581 = vst [vmem:[#allocation2 + $0x50] sm:$0xff] %v556_v58  ;;  %v557_v61 = vmax.f32 %v488_v59, 0.0 }
 0x1e3   :  { %582 = vst [vmem:[#allocation2 + $0x58] sm:$0xff] %v557_v61 }
 0x1e4   :  { %v492_v62 = vpop.f32.mrb[20].mxu1 }
 0x1e5   :  { %v493_v63 = vadd.f32 %v1089_v14, %v492_v62  ;;  %v780_v0 = vpop.f32.mrb[21].mxu1 }
 0x1e6   :  { %v495_v2 = vpop.f32.mrb[22].mxu1 }
 0x1e7   :  { %v558_v3 = vmax.f32 %v493_v63, 0.0  ;;  %v496_v4 = vadd.f32 %v1089_v14, %v495_v2  ;;  %v781_v5 = vpop.f32.mrb[23].mxu1 }
 0x1e9   :  { %583 = vst [vmem:[#allocation2 + $0x60] sm:$0xff] %v558_v3  ;;  %v559_v6 = vmax.f32 %v496_v4, 0.0 }
 0x1eb   :  { %584 = vst [vmem:[#allocation2 + $0x68] sm:$0xff] %v559_v6 }
 0x1ec   :  { %v500_v7 = vpop.f32.mrb[24].mxu1 }
 0x1ed   :  { %v501_v8 = vadd.f32 %v1089_v14, %v500_v7  ;;  %v784_v9 = vpop.f32.mrb[25].mxu1 }
 0x1ee   :  { %v503_v10 = vpop.f32.mrb[26].mxu1 }
 0x1ef   :  { %v560_v11 = vmax.f32 %v501_v8, 0.0  ;;  %v504_v12 = vadd.f32 %v1089_v14, %v503_v10  ;;  %v785_v13 = vpop.f32.mrb[27].mxu1 }
 0x1f1   :  { %585 = vst [vmem:[#allocation2 + $0x70] sm:$0xff] %v560_v11  ;;  %v561_v15 = vmax.f32 %v504_v12, 0.0 }
 0x1f3   :  { %586 = vst [vmem:[#allocation2 + $0x78] sm:$0xff] %v561_v15 }
 0x1f4   :  { %v508_v16 = vpop.f32.mrb[28].mxu1 }
 0x1f5   :  { %v509_v17 = vadd.f32 %v1089_v14, %v508_v16  ;;  %v788_v23 = vpop.f32.mrb[29].mxu1 }
 0x1f6   :  { %v511_v18 = vpop.f32.mrb[30].mxu1 }
 0x1f7   :  { %v562_v19 = vmax.f32 %v509_v17, 0.0  ;;  %v512_v20 = vadd.f32 %v1089_v14, %v511_v18  ;;  %v789_v1 = vpop.f32.mrb[31].mxu1 }
 0x1f9   :  { %587 = vst [vmem:[#allocation2 + $0x80] sm:$0xff] %v562_v19  ;;  %v563_v21 = vmax.f32 %v512_v20, 0.0 }
 0x1fb   :  { %588 = vst [vmem:[#allocation2 + $0x88] sm:$0xff] %v563_v21 }
 0x1fc   :  { %v516_v22 = vpop.f32.mrb[32].mxu1 }
 0x1fd   :  { %v517_v24 = vadd.f32 %v1089_v14, %v516_v22  ;;  %v792_v25 = vpop.f32.mrb[33].mxu1 }
 0x1fe   :  { %v519_v26 = vpop.f32.mrb[34].mxu1 }
 0x1ff   :  { %v564_v27 = vmax.f32 %v517_v24, 0.0  ;;  %v520_v28 = vadd.f32 %v1089_v14, %v519_v26  ;;  %v793_v29 = vpop.f32.mrb[35].mxu1 }
 0x201   :  { %589 = vst [vmem:[#allocation2 + $0x90] sm:$0xff] %v564_v27  ;;  %v565_v30 = vmax.f32 %v520_v28, 0.0 }
 0x203   :  { %590 = vst [vmem:[#allocation2 + $0x98] sm:$0xff] %v565_v30 }
 0x204   :  { %v524_v31 = vpop.f32.mrb[36].mxu1 }
 0x205   :  { %v525_v32 = vadd.f32 %v1089_v14, %v524_v31  ;;  %v796_v33 = vpop.f32.mrb[37].mxu1 }
 0x206   :  { %v527_v34 = vpop.f32.mrb[38].mxu1 }
 0x207   :  { %v566_v35 = vmax.f32 %v525_v32, 0.0  ;;  %v528_v36 = vadd.f32 %v1089_v14, %v527_v34  ;;  %v797_v37 = vpop.f32.mrb[39].mxu1 }
 0x209   :  { %591 = vst [vmem:[#allocation2 + $0xa0] sm:$0xff] %v566_v35  ;;  %v567_v38 = vmax.f32 %v528_v36, 0.0 }
 0x20b   :  { %592 = vst [vmem:[#allocation2 + $0xa8] sm:$0xff] %v567_v38 }
 0x20c   :  { %v532_v39 = vpop.f32.mrb[40].mxu1 }
 0x20d   :  { %v533_v40 = vadd.f32 %v1089_v14, %v532_v39  ;;  %v800_v41 = vpop.f32.mrb[41].mxu1 }
 0x20e   :  { %v535_v42 = vpop.f32.mrb[42].mxu1 }
 0x20f   :  { %v568_v43 = vmax.f32 %v533_v40, 0.0  ;;  %v536_v44 = vadd.f32 %v1089_v14, %v535_v42  ;;  %v801_v45 = vpop.f32.mrb[43].mxu1 }
 0x211   :  { %593 = vst [vmem:[#allocation2 + $0xb0] sm:$0xff] %v568_v43  ;;  %v569_v46 = vmax.f32 %v536_v44, 0.0 }
 0x213   :  { %594 = vst [vmem:[#allocation2 + $0xb8] sm:$0xff] %v569_v46 }
 0x214   :  { %v540_v47 = vpop.f32.mrb[44].mxu1 }
 0x215   :  { %v541_v48 = vadd.f32 %v1089_v14, %v540_v47  ;;  %v804_v49 = vpop.f32.mrb[45].mxu1 }
 0x216   :  { %v543_v50 = vpop.f32.mrb[46].mxu1 }
 0x217   :  { %v570_v51 = vmax.f32 %v541_v48, 0.0  ;;  %v805_v52 = vpop.f32.mrb[47].mxu1 }
 0x219   :  { %595 = vst [vmem:[#allocation2 + $0xc0] sm:$0xff] %v570_v51 }
 0x21a   :  { %860 = shalt.err (!%p857_p4)
}
 0x21b   :  { %s861_s15 = scalar_lea.hbm %s1133_s5, 3200 }
 0x21c   :  { %p862_p5 = scmp.ne.s32.totalorder %s1133_s5, %s861_s15  ;;  %p865_p6 = scmp.lt.u32.totalorder %s861_s15, %s1133_s5 }
 0x21e   :  { %p867_p7 = pnand %p865_p6, %p862_p5 }
 0x220   :  { %870 = shalt.err (!%p867_p7)
}
 0x221   :  { %s876_s20 = smov 128   ;;  %s877_s21 = smov 8  }
 0x222   :  { %607 = dma.vmem_to_hbm [thread:$0]  %s602_s4, 3200, %s1133_s5, [#allocation3], %s876_s20, %s876_s20, %s877_s21  }
 0x223   :  { %871 = dma.done.wait [#allocation3], 3200  }
 0x224   :  { %872 = vsyncadd [#allocation3], 4294964096 }
 0x225   :  { %611 = vsyncpa [#allocation3], 1 }

// kernel: tpu_custom_call.1
= control target key start
LH: loop header
LB: loop body
LE: loop exit
PB: predicated region body
PF: predicated region fallthrough
CT: control target
= control target key end

     0   :  { %v873_v1 = vmov 0.0   ;;  %vm874_vm0 = vmmov 0   ;;  %vm125_vm1 = vcmask 130048   ;;  %s1128_s0 = inlined_call_operand.vmem [shape: bf16[200,16], index: 0, kind: input, shape index: {}]   ;;  %s1129_s1 = inlined_call_operand.vmem [shape: bf16[16,128], index: 1, kind: input, shape index: {}]   ;;  %s1130_s2 = inlined_call_operand.vmem [shape: f32[1,128], index: 2, kind: input, shape index: {}]   ;;  %s1131_s3 = inlined_call_operand.vmem [shape: bf16[128,128], index: 3, kind: input, shape index: {}]   ;;  %s1132_s4 = inlined_call_operand.vmem [shape: f32[1,128], index: 4, kind: input, shape index: {}]   ;;  %s1133_s5 = inlined_call_operand.hbm [shape: f32[200,128], index: 5, kind: output, shape index: {}]  }
   0x1   :  { %v827_v0 = vld [vmem:[%s1129_s1] sm:$0xff]   ;;  %684 = vmatprep.subr.bf16.mxu0 %v873_v1  ;;  %806 = vmatprep.subr.bf16.mxu1 %v873_v1  ;;  %v829_v3 = vld [vmem:[%s1128_s0 + $0x8] sm:$0xff]   ;;  %v830_v6 = vld [vmem:[%s1128_s0 + $0x10] sm:$0xff]  }
   0x2   :  { %v828_v2 = vld [vmem:[%s1128_s0] sm:$0xff]   ;;  %685 = vmatpush3.bf16.msra.mxu0 %v827_v0  ;;  %686 = vmatprep.mubr.msk.bf16.mxu0 %vm874_vm0, %v873_v1  ;;  %v842_v5 = vld [vmem:[%s1131_s3 + $0x8] sm:$0xff]   ;;  %v843_v7 = vld [vmem:[%s1131_s3 + $0x10] sm:$0xff]  }
   0x3   :  { %738 = vmatprep.subr.bf16.mxu0 %v873_v1  ;;  %758 = vmatprep.mubr.msk.bf16.mxu1 %vm874_vm0, %v873_v1  ;;  %v841_v4 = vld [vmem:[%s1131_s3] sm:$0xff]  }
   0x4   :  { %814 = vmatpush3.bf16.msra.mxu1 %v841_v4 }
   0x5   :  { %687 = vmatmul.mubr.msk.bf16.vlgmr.msra.gmra.mrb[0].mxu0 %vm125_vm1, %v828_v2  ;;  %807 = vmatprep.subr.bf16.mxu1 %v873_v1 }
   0x6   :  { %690 = vmatprep.mubr.msk.bf16.mxu0 %vm874_vm0, %v873_v1  ;;  %739 = vmatpush3.bf16.msra.mxu0 %v841_v4 }
   0x7   :  { %740 = vmatprep.subr.bf16.mxu0 %v873_v1 }
   0x8   :  { %815 = vmatpush3.bf16.msra.mxu1 %v842_v5 }
   0xa   :  { %741 = vmatpush3.bf16.msra.mxu0 %v842_v5 }
   0xb   :  { %742 = vmatprep.subr.bf16.mxu0 %v873_v1 }
   0xd   :  { %691 = vmatmul.mubr.msk.bf16.gmra.mrb[4].mxu0 %vm125_vm1, %v829_v3 }
   0xe   :  { %694 = vmatprep.mubr.msk.bf16.mxu0 %vm874_vm0, %v873_v1 }
  0x15   :  { %695 = vmatmul.mubr.msk.bf16.gmra.mrb[8].mxu0 %vm125_vm1, %v830_v6 }
  0x16   :  { %10 = vsyncpa [#allocation3], 0  ;;  %698 = vmatprep.mubr.msk.bf16.mxu0 %vm874_vm0, %v873_v1  ;;  %808 = vmatprep.subr.bf16.mxu1 %v873_v1  ;;  %v844_v8 = vld [vmem:[%s1131_s3 + $0x18] sm:$0xff]   ;;  %v845_v10 = vld [vmem:[%s1131_s3 + $0x20] sm:$0xff]  }
  0x17   :  { %743 = vmatpush3.bf16.msra.mxu0 %v843_v7  ;;  %816 = vmatpush3.bf16.msra.mxu1 %v843_v7  ;;  %v831_v9 = vld [vmem:[%s1128_s0 + $0x18] sm:$0xff]   ;;  %v846_v11 = vld [vmem:[%s1131_s3 + $0x28] sm:$0xff]   ;;  %v832_v12 = vld [vmem:[%s1128_s0 + $0x20] sm:$0xff]  }
  0x18   :  { %744 = vmatprep.subr.bf16.mxu0 %v873_v1  ;;  %809 = vmatprep.subr.bf16.mxu1 %v873_v1  ;;  %v833_v13 = vld [vmem:[%s1128_s0 + $0x28] sm:$0xff]   ;;  %v834_v14 = vld [vmem:[%s1128_s0 + $0x30] sm:$0xff]   ;;  %v835_v15 = vld [vmem:[%s1128_s0 + $0x38] sm:$0xff]  }
  0x19   :  { %v836_v16 = vld [vmem:[%s1128_s0 + $0x40] sm:$0xff]   ;;  %v837_v17 = vld [vmem:[%s1128_s0 + $0x48] sm:$0xff]   ;;  %v838_v18 = vld [vmem:[%s1128_s0 + $0x50] sm:$0xff]  }
  0x1a   :  { %v847_v19 = vld [vmem:[%s1131_s3 + $0x30] sm:$0xff]   ;;  %v839_v20 = vld [vmem:[%s1128_s0 + $0x58] sm:$0xff]   ;;  %v840_v22 = vld [vmem:[%s1128_s0 + $0x60] ss:$0 sps:$4 sm:$0xff]  }
  0x1b   :  { %745 = vmatpush3.bf16.msra.mxu0 %v844_v8  ;;  %817 = vmatpush3.bf16.msra.mxu1 %v844_v8  ;;  %v848_v21 = vld [vmem:[%s1131_s3 + $0x38] sm:$0xff]   ;;  %v1037_v23 = vld [vmem:[%s1130_s2] ss:$0 sm:$0xff]  ;;  %s875_s3 = smov [#allocation2]  }
  0x1c   :  { %746 = vmatprep.subr.bf16.mxu0 %v873_v1  ;;  %810 = vmatprep.subr.bf16.mxu1 %v873_v1 }
  0x1d   :  { %699 = vmatmul.mubr.msk.bf16.gmra.mrb[12].mxu0 %vm125_vm1, %v831_v9 }
  0x1e   :  { %702 = vmatprep.mubr.msk.bf16.mxu0 %vm874_vm0, %v873_v1 }
  0x1f   :  { %747 = vmatpush3.bf16.msra.mxu0 %v845_v10  ;;  %818 = vmatpush3.bf16.msra.mxu1 %v845_v10 }
  0x20   :  { %748 = vmatprep.subr.bf16.mxu0 %v873_v1  ;;  %811 = vmatprep.subr.bf16.mxu1 %v873_v1 }
  0x23   :  { %749 = vmatpush3.bf16.msra.mxu0 %v846_v11  ;;  %819 = vmatpush3.bf16.msra.mxu1 %v846_v11 }
  0x24   :  { %750 = vmatprep.subr.bf16.mxu0 %v873_v1  ;;  %812 = vmatprep.subr.bf16.mxu1 %v873_v1 }
  0x25   :  { %703 = vmatmul.mubr.msk.bf16.gmra.mrb[16].mxu0 %vm125_vm1, %v832_v12 }
  0x26   :  { %706 = vmatprep.mubr.msk.bf16.mxu0 %vm874_vm0, %v873_v1 }
  0x27   :  { %751 = vmatpush3.bf16.msra.mxu0 %v847_v19  ;;  %820 = vmatpush3.bf16.msra.mxu1 %v847_v19 }
  0x28   :  { %752 = vmatprep.subr.bf16.mxu0 %v873_v1  ;;  %813 = vmatprep.subr.bf16.mxu1 %v873_v1 }
  0x2b   :  { %753 = vmatpush3.bf16.msra.mxu0 %v848_v21  ;;  %821 = vmatpush3.bf16.msra.mxu1 %v848_v21 }
  0x2d   :  { %707 = vmatmul.mubr.msk.bf16.gmra.mrb[20].mxu0 %vm125_vm1, %v833_v13 }
  0x2e   :  { %710 = vmatprep.mubr.msk.bf16.mxu0 %vm874_vm0, %v873_v1 }
  0x35   :  { %711 = vmatmul.mubr.msk.bf16.gmra.mrb[24].mxu0 %vm125_vm1, %v834_v14 }
  0x36   :  { %714 = vmatprep.mubr.msk.bf16.mxu0 %vm874_vm0, %v873_v1 }
  0x3d   :  { %715 = vmatmul.mubr.msk.bf16.gmra.mrb[28].mxu0 %vm125_vm1, %v835_v15 }
  0x3e   :  { %718 = vmatprep.mubr.msk.bf16.mxu0 %vm874_vm0, %v873_v1 }
  0x45   :  { %719 = vmatmul.mubr.msk.bf16.gmra.mrb[32].mxu0 %vm125_vm1, %v836_v16 }
  0x46   :  { %722 = vmatprep.mubr.msk.bf16.mxu0 %vm874_vm0, %v873_v1 }
  0x4d   :  { %723 = vmatmul.mubr.msk.bf16.gmra.mrb[36].mxu0 %vm125_vm1, %v837_v17 }
  0x4e   :  { %726 = vmatprep.mubr.msk.bf16.mxu0 %vm874_vm0, %v873_v1 }
  0x55   :  { %727 = vmatmul.mubr.msk.bf16.gmra.mrb[40].mxu0 %vm125_vm1, %v838_v18 }
  0x56   :  { %730 = vmatprep.mubr.msk.bf16.mxu0 %vm874_vm0, %v873_v1 }
  0x5d   :  { %731 = vmatmul.mubr.msk.bf16.gmra.mrb[44].mxu0 %vm125_vm1, %v839_v20 }
  0x5e   :  { %734 = vmatprep.mubr.msk.bf16.mxu0 %vm874_vm0, %v873_v1 }
  0x65   :  { %735 = vmatmul.mubr.msk.bf16.gmra.mrb[48].mxu0 %vm125_vm1, %v840_v22 }
  0x66   :  { %754 = vmatprep.mubr.msk.bf16.mxu0 %vm874_vm0, %v873_v1 }
  0xd8   :  { %v199_v24 = vpop.f32.mrb[0].mxu0 }
  0xd9   :  { %v200_v25 = vadd.f32 %v1037_v23, %v199_v24  ;;  %v688_v26 = vpop.f32.mrb[1].mxu0 }
  0xda   :  { %v202_v27 = vpop.f32.mrb[2].mxu0 }
  0xdb   :  { %v203_v28 = vadd.f32 %v1037_v23, %v202_v27  ;;  %v689_v29 = vpop.f32.mrb[3].mxu0  ;;  %v301_v30 = vmax.f32 %v200_v25, 0.0 }
  0xdd   :  { %v302_v31 = vmax.f32 %v203_v28, 0.0 }
  0xdf   :  { %v326_v32 = vpack.c.bf16 %v302_v31, %v301_v30 }
  0xe0   :  { %v207_v33 = vpop.f32.mrb[4].mxu0 }
  0xe1   :  { %v208_v34 = vadd.f32 %v1037_v23, %v207_v33  ;;  %v692_v35 = vpop.f32.mrb[5].mxu0  ;;  %755 = vmatmul.mubr.bf16.vlgmr.msra.gmra.mrb[52].mxu0 %v326_v32 }
  0xe2   :  { %v210_v36 = vpop.f32.mrb[6].mxu0 }
  0xe3   :  { %v211_v37 = vadd.f32 %v1037_v23, %v210_v36  ;;  %v693_v38 = vpop.f32.mrb[7].mxu0  ;;  %v303_v39 = vmax.f32 %v208_v34, 0.0 }
  0xe5   :  { %v304_v40 = vmax.f32 %v211_v37, 0.0 }
  0xe7   :  { %v327_v41 = vpack.c.bf16 %v304_v40, %v303_v39 }
  0xe8   :  { %v215_v42 = vpop.f32.mrb[8].mxu0 }
  0xe9   :  { %v216_v43 = vadd.f32 %v1037_v23, %v215_v42  ;;  %v696_v44 = vpop.f32.mrb[9].mxu0  ;;  %759 = vmatmul.mubr.bf16.vlgmr.msra.gmra.mrb[0].mxu1 %v327_v41 }
  0xea   :  { %v218_v45 = vpop.f32.mrb[10].mxu0  ;;  %762 = vmatprep.mubr.msk.bf16.mxu1 %vm874_vm0, %v873_v1 }
  0xeb   :  { %v219_v46 = vadd.f32 %v1037_v23, %v218_v45  ;;  %v697_v47 = vpop.f32.mrb[11].mxu0  ;;  %v305_v48 = vmax.f32 %v216_v43, 0.0 }
  0xed   :  { %v306_v49 = vmax.f32 %v219_v46, 0.0 }
  0xef   :  { %v328_v50 = vpack.c.bf16 %v306_v49, %v305_v48 }
  0xf0   :  { %v223_v51 = vpop.f32.mrb[12].mxu0 }
  0xf1   :  { %v224_v52 = vadd.f32 %v1037_v23, %v223_v51  ;;  %v700_v53 = vpop.f32.mrb[13].mxu0  ;;  %763 = vmatmul.mubr.bf16.gmra.mrb[4].mxu1 %v328_v50 }
  0xf2   :  { %v226_v54 = vpop.f32.mrb[14].mxu0  ;;  %766 = vmatprep.mubr.msk.bf16.mxu1 %vm874_vm0, %v873_v1 }
  0xf3   :  { %v227_v55 = vadd.f32 %v1037_v23, %v226_v54  ;;  %v701_v56 = vpop.f32.mrb[15].mxu0  ;;  %v307_v57 = vmax.f32 %v224_v52, 0.0 }
  0xf5   :  { %v308_v58 = vmax.f32 %v227_v55, 0.0 }
  0xf7   :  { %v329_v59 = vpack.c.bf16 %v308_v58, %v307_v57 }
  0xf8   :  { %v231_v60 = vpop.f32.mrb[16].mxu0 }
  0xf9   :  { %v232_v61 = vadd.f32 %v1037_v23, %v231_v60  ;;  %v704_v62 = vpop.f32.mrb[17].mxu0  ;;  %767 = vmatmul.mubr.bf16.gmra.mrb[8].mxu1 %v329_v59 }
  0xfa   :  { %v234_v63 = vpop.f32.mrb[18].mxu0  ;;  %770 = vmatprep.mubr.msk.bf16.mxu1 %vm874_vm0, %v873_v1 }
  0xfb   :  { %v235_v0 = vadd.f32 %v1037_v23, %v234_v63  ;;  %v705_v2 = vpop.f32.mrb[19].mxu0  ;;  %v309_v3 = vmax.f32 %v232_v61, 0.0 }
  0xfd   :  { %v310_v4 = vmax.f32 %v235_v0, 0.0 }
  0xff   :  { %v330_v5 = vpack.c.bf16 %v310_v4, %v309_v3 }
 0x100   :  { %v239_v6 = vpop.f32.mrb[20].mxu0 }
 0x101   :  { %v240_v7 = vadd.f32 %v1037_v23, %v239_v6  ;;  %v708_v8 = vpop.f32.mrb[21].mxu0  ;;  %771 = vmatmul.mubr.bf16.gmra.mrb[12].mxu1 %v330_v5 }
 0x102   :  { %v242_v9 = vpop.f32.mrb[22].mxu0  ;;  %774 = vmatprep.mubr.msk.bf16.mxu1 %vm874_vm0, %v873_v1 }
 0x103   :  { %v243_v10 = vadd.f32 %v1037_v23, %v242_v9  ;;  %v709_v11 = vpop.f32.mrb[23].mxu0  ;;  %v311_v12 = vmax.f32 %v240_v7, 0.0 }
 0x105   :  { %v312_v13 = vmax.f32 %v243_v10, 0.0 }
 0x107   :  { %v331_v14 = vpack.c.bf16 %v312_v13, %v311_v12 }
 0x108   :  { %v247_v15 = vpop.f32.mrb[24].mxu0 }
 0x109   :  { %v248_v16 = vadd.f32 %v1037_v23, %v247_v15  ;;  %v712_v17 = vpop.f32.mrb[25].mxu0  ;;  %775 = vmatmul.mubr.bf16.gmra.mrb[16].mxu1 %v331_v14  ;;  %v1089_v14 = vld [vmem:[%s1132_s4] ss:$0 sm:$0xff]  ;;  %s601_s4 = sshll.u32 %s875_s3, 4  ;;  %s602_s4 = int_to_ptr.vmem [resolvable:$true] %s601_s4 }
 0x10a   :  { %v250_v18 = vpop.f32.mrb[26].mxu0  ;;  %778 = vmatprep.mubr.msk.bf16.mxu1 %vm874_vm0, %v873_v1  ;;  %s849_s12 = scalar_lea.vmem %s602_s4, 3200  ;;  %p854_p1 = scmp.lt.s32.totalorder %s602_s4, %s602_s4 }
 0x10b   :  { %v251_v19 = vadd.f32 %v1037_v23, %v250_v18  ;;  %v713_v20 = vpop.f32.mrb[27].mxu0  ;;  %v313_v21 = vmax.f32 %v248_v16, 0.0  ;;  %p850_p0 = scmp.ne.s32.totalorder %s602_s4, %s849_s12  ;;  %p855_p2 = scmp.lt.s32.totalorder %s849_s12, %s849_s12 }
 0x10d   :  { %v314_v22 = vmax.f32 %v251_v19, 0.0  ;;  %p856_p3 = por %p855_p2, %p854_p1 }
 0x10f   :  { %v332_v24 = vpack.c.bf16 %v314_v22, %v313_v21  ;;  %p857_p4 = pnand %p856_p3, %p850_p0 }
 0x110   :  { %v255_v25 = vpop.f32.mrb[28].mxu0 }
 0x111   :  { %v256_v26 = vadd.f32 %v1037_v23, %v255_v25  ;;  %v716_v27 = vpop.f32.mrb[29].mxu0  ;;  %779 = vmatmul.mubr.bf16.gmra.mrb[20].mxu1 %v332_v24 }
 0x112   :  { %v258_v28 = vpop.f32.mrb[30].mxu0  ;;  %782 = vmatprep.mubr.msk.bf16.mxu1 %vm874_vm0, %v873_v1 }
 0x113   :  { %v259_v29 = vadd.f32 %v1037_v23, %v258_v28  ;;  %v717_v30 = vpop.f32.mrb[31].mxu0  ;;  %v315_v31 = vmax.f32 %v256_v26, 0.0 }
 0x115   :  { %v316_v32 = vmax.f32 %v259_v29, 0.0 }
 0x117   :  { %v333_v33 = vpack.c.bf16 %v316_v32, %v315_v31 }
 0x118   :  { %v263_v34 = vpop.f32.mrb[32].mxu0 }
 0x119   :  { %v264_v35 = vadd.f32 %v1037_v23, %v263_v34  ;;  %v720_v36 = vpop.f32.mrb[33].mxu0  ;;  %783 = vmatmul.mubr.bf16.gmra.mrb[24].mxu1 %v333_v33 }
 0x11a   :  { %v266_v37 = vpop.f32.mrb[34].mxu0  ;;  %786 = vmatprep.mubr.msk.bf16.mxu1 %vm874_vm0, %v873_v1 }
 0x11b   :  { %v267_v38 = vadd.f32 %v1037_v23, %v266_v37  ;;  %v721_v39 = vpop.f32.mrb[35].mxu0  ;;  %v317_v40 = vmax.f32 %v264_v35, 0.0 }
 0x11d   :  { %v318_v41 = vmax.f32 %v267_v38, 0.0 }
 0x11f   :  { %v334_v42 = vpack.c.bf16 %v318_v41, %v317_v40 }
 0x120   :  { %v271_v43 = vpop.f32.mrb[36].mxu0 }
 0x121   :  { %v272_v44 = vadd.f32 %v1037_v23, %v271_v43  ;;  %v724_v45 = vpop.f32.mrb[37].mxu0  ;;  %787 = vmatmul.mubr.bf16.gmra.mrb[28].mxu1 %v334_v42 }
 0x122   :  { %v274_v46 = vpop.f32.mrb[38].mxu0  ;;  %790 = vmatprep.mubr.msk.bf16.mxu1 %vm874_vm0, %v873_v1 }
 0x123   :  { %v275_v47 = vadd.f32 %v1037_v23, %v274_v46  ;;  %v725_v48 = vpop.f32.mrb[39].mxu0  ;;  %v319_v49 = vmax.f32 %v272_v44, 0.0 }
 0x125   :  { %v320_v50 = vmax.f32 %v275_v47, 0.0 }
 0x127   :  { %v335_v51 = vpack.c.bf16 %v320_v50, %v319_v49 }
 0x128   :  { %v279_v52 = vpop.f32.mrb[40].mxu0 }
 0x129   :  { %v280_v53 = vadd.f32 %v1037_v23, %v279_v52  ;;  %v728_v54 = vpop.f32.mrb[41].mxu0  ;;  %791 = vmatmul.mubr.bf16.gmra.mrb[32].mxu1 %v335_v51 }
 0x12a   :  { %v282_v55 = vpop.f32.mrb[42].mxu0  ;;  %794 = vmatprep.mubr.msk.bf16.mxu1 %vm874_vm0, %v873_v1 }
 0x12b   :  { %v283_v56 = vadd.f32 %v1037_v23, %v282_v55  ;;  %v729_v57 = vpop.f32.mrb[43].mxu0  ;;  %v321_v58 = vmax.f32 %v280_v53, 0.0 }
 0x12d   :  { %v322_v59 = vmax.f32 %v283_v56, 0.0 }
 0x12f   :  { %v336_v60 = vpack.c.bf16 %v322_v59, %v321_v58 }
 0x130   :  { %v287_v61 = vpop.f32.mrb[44].mxu0 }
 0x131   :  { %v288_v62 = vadd.f32 %v1037_v23, %v287_v61  ;;  %v732_v63 = vpop.f32.mrb[45].mxu0  ;;  %795 = vmatmul.mubr.bf16.gmra.mrb[36].mxu1 %v336_v60 }
 0x132   :  { %v290_v0 = vpop.f32.mrb[46].mxu0  ;;  %798 = vmatprep.mubr.msk.bf16.mxu1 %vm874_vm0, %v873_v1 }
 0x133   :  { %v291_v2 = vadd.f32 %v1037_v23, %v290_v0  ;;  %v733_v3 = vpop.f32.mrb[47].mxu0  ;;  %v323_v4 = vmax.f32 %v288_v62, 0.0 }
 0x135   :  { %v324_v5 = vmax.f32 %v291_v2, 0.0 }
 0x137   :  { %v337_v6 = vpack.c.bf16 %v324_v5, %v323_v4 }
 0x138   :  { %v295_v7 = vpop.f32.mrb[48].mxu0 }
 0x139   :  { %v296_v8 = vadd.f32 %v1037_v23, %v295_v7  ;;  %v736_v9 = vpop.f32.mrb[49].mxu0  ;;  %799 = vmatmul.mubr.bf16.gmra.mrb[40].mxu1 %v337_v6 }
 0x13a   :  { %v298_v10 = vpop.f32.mrb[50].mxu0  ;;  %802 = vmatprep.mubr.msk.bf16.mxu1 %vm874_vm0, %v873_v1 }
 0x13b   :  { %v325_v11 = vmax.f32 %v296_v8, 0.0  ;;  %v737_v12 = vpop.f32.mrb[51].mxu0 }
 0x13d   :  { %v338_v13 = vpack.c.bf16 %v325_v11, %v325_v11 }
 0x141   :  { %803 = vmatmul.mubr.bf16.gmra.mrb[44].mxu1 %v338_v13 }
 0x1b4   :  { %v444_v15 = vpop.f32.mrb[52].mxu0 }
 0x1b5   :  { %v445_v16 = vadd.f32 %v1089_v14, %v444_v15  ;;  %v756_v17 = vpop.f32.mrb[53].mxu0 }
 0x1b6   :  { %v447_v23 = vpop.f32.mrb[54].mxu0 }
 0x1b7   :  { %v546_v18 = vmax.f32 %v445_v16, 0.0  ;;  %v448_v19 = vadd.f32 %v1089_v14, %v447_v23  ;;  %v757_v20 = vpop.f32.mrb[55].mxu0 }
 0x1b9   :  { %571 = vst [vmem:[#allocation2] sm:$0xff] %v546_v18  ;;  %v547_v1 = vmax.f32 %v448_v19, 0.0 }
 0x1bb   :  { %572 = vst [vmem:[#allocation2 + $0x8] sm:$0xff] %v547_v1 }
 0x1bc   :  { %v452_v21 = vpop.f32.mrb[0].mxu1 }
 0x1bd   :  { %v453_v22 = vadd.f32 %v1089_v14, %v452_v21  ;;  %v760_v24 = vpop.f32.mrb[1].mxu1 }
 0x1be   :  { %v455_v25 = vpop.f32.mrb[2].mxu1 }
 0x1bf   :  { %v548_v26 = vmax.f32 %v453_v22, 0.0  ;;  %v456_v27 = vadd.f32 %v1089_v14, %v455_v25  ;;  %v761_v28 = vpop.f32.mrb[3].mxu1 }
 0x1c1   :  { %573 = vst [vmem:[#allocation2 + $0x10] sm:$0xff] %v548_v26  ;;  %v549_v29 = vmax.f32 %v456_v27, 0.0 }
 0x1c3   :  { %574 = vst [vmem:[#allocation2 + $0x18] sm:$0xff] %v549_v29 }
 0x1c4   :  { %v460_v30 = vpop.f32.mrb[4].mxu1 }
 0x1c5   :  { %v461_v31 = vadd.f32 %v1089_v14, %v460_v30  ;;  %v764_v32 = vpop.f32.mrb[5].mxu1 }
 0x1c6   :  { %v463_v33 = vpop.f32.mrb[6].mxu1 }
 0x1c7   :  { %v550_v34 = vmax.f32 %v461_v31, 0.0  ;;  %v464_v35 = vadd.f32 %v1089_v14, %v463_v33  ;;  %v765_v36 = vpop.f32.mrb[7].mxu1 }
 0x1c9   :  { %575 = vst [vmem:[#allocation2 + $0x20] sm:$0xff] %v550_v34  ;;  %v551_v37 = vmax.f32 %v464_v35, 0.0 }
 0x1cb   :  { %576 = vst [vmem:[#allocation2 + $0x28] sm:$0xff] %v551_v37 }
 0x1cc   :  { %v468_v38 = vpop.f32.mrb[8].mxu1 }
 0x1cd   :  { %v469_v39 = vadd.f32 %v1089_v14, %v468_v38  ;;  %v768_v40 = vpop.f32.mrb[9].mxu1 }
 0x1ce   :  { %v471_v41 = vpop.f32.mrb[10].mxu1 }
 0x1cf   :  { %v552_v42 = vmax.f32 %v469_v39, 0.0  ;;  %v472_v43 = vadd.f32 %v1089_v14, %v471_v41  ;;  %v769_v44 = vpop.f32.mrb[11].mxu1 }
 0x1d1   :  { %577 = vst [vmem:[#allocation2 + $0x30] sm:$0xff] %v552_v42  ;;  %v553_v45 = vmax.f32 %v472_v43, 0.0 }
 0x1d3   :  { %578 = vst [vmem:[#allocation2 + $0x38] sm:$0xff] %v553_v45 }
 0x1d4   :  { %v476_v46 = vpop.f32.mrb[12].mxu1 }
 0x1d5   :  { %v477_v47 = vadd.f32 %v1089_v14, %v476_v46  ;;  %v772_v48 = vpop.f32.mrb[13].mxu1 }
 0x1d6   :  { %v479_v49 = vpop.f32.mrb[14].mxu1 }
 0x1d7   :  { %v554_v50 = vmax.f32 %v477_v47, 0.0  ;;  %v480_v51 = vadd.f32 %v1089_v14, %v479_v49  ;;  %v773_v52 = vpop.f32.mrb[15].mxu1 }
 0x1d9   :  { %579 = vst [vmem:[#allocation2 + $0x40] sm:$0xff] %v554_v50  ;;  %v555_v53 = vmax.f32 %v480_v51, 0.0 }
 0x1db   :  { %580 = vst [vmem:[#allocation2 + $0x48] sm:$0xff] %v555_v53 }
 0x1dc   :  { %v484_v54 = vpop.f32.mrb[16].mxu1 }
 0x1dd   :  { %v485_v55 = vadd.f32 %v1089_v14, %v484_v54  ;;  %v776_v56 = vpop.f32.mrb[17].mxu1 }
 0x1de   :  { %v487_v57 = vpop.f32.mrb[18].mxu1 }
 0x1df   :  { %v556_v58 = vmax.f32 %v485_v55, 0.0  ;;  %v488_v59 = vadd.f32 %v1089_v14, %v487_v57  ;;  %v777_v60 = vpop.f32.mrb[19].mxu1 }
 0x1e1   :  { %581 = vst [vmem:[#allocation2 + $0x50] sm:$0xff] %v556_v58  ;;  %v557_v61 = vmax.f32 %v488_v59, 0.0 }
 0x1e3   :  { %582 = vst [vmem:[#allocation2 + $0x58] sm:$0xff] %v557_v61 }
 0x1e4   :  { %v492_v62 = vpop.f32.mrb[20].mxu1 }
 0x1e5   :  { %v493_v63 = vadd.f32 %v1089_v14, %v492_v62  ;;  %v780_v0 = vpop.f32.mrb[21].mxu1 }
 0x1e6   :  { %v495_v2 = vpop.f32.mrb[22].mxu1 }
 0x1e7   :  { %v558_v3 = vmax.f32 %v493_v63, 0.0  ;;  %v496_v4 = vadd.f32 %v1089_v14, %v495_v2  ;;  %v781_v5 = vpop.f32.mrb[23].mxu1 }
 0x1e9   :  { %583 = vst [vmem:[#allocation2 + $0x60] sm:$0xff] %v558_v3  ;;  %v559_v6 = vmax.f32 %v496_v4, 0.0 }
 0x1eb   :  { %584 = vst [vmem:[#allocation2 + $0x68] sm:$0xff] %v559_v6 }
 0x1ec   :  { %v500_v7 = vpop.f32.mrb[24].mxu1 }
 0x1ed   :  { %v501_v8 = vadd.f32 %v1089_v14, %v500_v7  ;;  %v784_v9 = vpop.f32.mrb[25].mxu1 }
 0x1ee   :  { %v503_v10 = vpop.f32.mrb[26].mxu1 }
 0x1ef   :  { %v560_v11 = vmax.f32 %v501_v8, 0.0  ;;  %v504_v12 = vadd.f32 %v1089_v14, %v503_v10  ;;  %v785_v13 = vpop.f32.mrb[27].mxu1 }
 0x1f1   :  { %585 = vst [vmem:[#allocation2 + $0x70] sm:$0xff] %v560_v11  ;;  %v561_v15 = vmax.f32 %v504_v12, 0.0 }
 0x1f3   :  { %586 = vst [vmem:[#allocation2 + $0x78] sm:$0xff] %v561_v15 }
 0x1f4   :  { %v508_v16 = vpop.f32.mrb[28].mxu1 }
 0x1f5   :  { %v509_v17 = vadd.f32 %v1089_v14, %v508_v16  ;;  %v788_v23 = vpop.f32.mrb[29].mxu1 }
 0x1f6   :  { %v511_v18 = vpop.f32.mrb[30].mxu1 }
 0x1f7   :  { %v562_v19 = vmax.f32 %v509_v17, 0.0  ;;  %v512_v20 = vadd.f32 %v1089_v14, %v511_v18  ;;  %v789_v1 = vpop.f32.mrb[31].mxu1 }
 0x1f9   :  { %587 = vst [vmem:[#allocation2 + $0x80] sm:$0xff] %v562_v19  ;;  %v563_v21 = vmax.f32 %v512_v20, 0.0 }
 0x1fb   :  { %588 = vst [vmem:[#allocation2 + $0x88] sm:$0xff] %v563_v21 }
 0x1fc   :  { %v516_v22 = vpop.f32.mrb[32].mxu1 }
 0x1fd   :  { %v517_v24 = vadd.f32 %v1089_v14, %v516_v22  ;;  %v792_v25 = vpop.f32.mrb[33].mxu1 }
 0x1fe   :  { %v519_v26 = vpop.f32.mrb[34].mxu1 }
 0x1ff   :  { %v564_v27 = vmax.f32 %v517_v24, 0.0  ;;  %v520_v28 = vadd.f32 %v1089_v14, %v519_v26  ;;  %v793_v29 = vpop.f32.mrb[35].mxu1 }
 0x201   :  { %589 = vst [vmem:[#allocation2 + $0x90] sm:$0xff] %v564_v27  ;;  %v565_v30 = vmax.f32 %v520_v28, 0.0 }
 0x203   :  { %590 = vst [vmem:[#allocation2 + $0x98] sm:$0xff] %v565_v30 }
 0x204   :  { %v524_v31 = vpop.f32.mrb[36].mxu1 }
 0x205   :  { %v525_v32 = vadd.f32 %v1089_v14, %v524_v31  ;;  %v796_v33 = vpop.f32.mrb[37].mxu1 }
 0x206   :  { %v527_v34 = vpop.f32.mrb[38].mxu1 }
 0x207   :  { %v566_v35 = vmax.f32 %v525_v32, 0.0  ;;  %v528_v36 = vadd.f32 %v1089_v14, %v527_v34  ;;  %v797_v37 = vpop.f32.mrb[39].mxu1 }
 0x209   :  { %591 = vst [vmem:[#allocation2 + $0xa0] sm:$0xff] %v566_v35  ;;  %v567_v38 = vmax.f32 %v528_v36, 0.0 }
 0x20b   :  { %592 = vst [vmem:[#allocation2 + $0xa8] sm:$0xff] %v567_v38 }
 0x20c   :  { %v532_v39 = vpop.f32.mrb[40].mxu1 }
 0x20d   :  { %v533_v40 = vadd.f32 %v1089_v14, %v532_v39  ;;  %v800_v41 = vpop.f32.mrb[41].mxu1 }
 0x20e   :  { %v535_v42 = vpop.f32.mrb[42].mxu1 }
 0x20f   :  { %v568_v43 = vmax.f32 %v533_v40, 0.0  ;;  %v536_v44 = vadd.f32 %v1089_v14, %v535_v42  ;;  %v801_v45 = vpop.f32.mrb[43].mxu1 }
 0x211   :  { %593 = vst [vmem:[#allocation2 + $0xb0] sm:$0xff] %v568_v43  ;;  %v569_v46 = vmax.f32 %v536_v44, 0.0 }
 0x213   :  { %594 = vst [vmem:[#allocation2 + $0xb8] sm:$0xff] %v569_v46 }
 0x214   :  { %v540_v47 = vpop.f32.mrb[44].mxu1 }
 0x215   :  { %v541_v48 = vadd.f32 %v1089_v14, %v540_v47  ;;  %v804_v49 = vpop.f32.mrb[45].mxu1 }
 0x216   :  { %v543_v50 = vpop.f32.mrb[46].mxu1 }
 0x217   :  { %v570_v51 = vmax.f32 %v541_v48, 0.0  ;;  %v805_v52 = vpop.f32.mrb[47].mxu1 }
 0x219   :  { %595 = vst [vmem:[#allocation2 + $0xc0] sm:$0xff] %v570_v51 }
 0x21a   :  { %860 = shalt.err (!%p857_p4)
}
 0x21b   :  { %s861_s15 = scalar_lea.hbm %s1133_s5, 3200 }
 0x21c   :  { %p862_p5 = scmp.ne.s32.totalorder %s1133_s5, %s861_s15  ;;  %p865_p6 = scmp.lt.u32.totalorder %s861_s15, %s1133_s5 }
 0x21e   :  { %p867_p7 = pnand %p865_p6, %p862_p5 }
 0x220   :  { %870 = shalt.err (!%p867_p7)
}
 0x221   :  { %s876_s20 = smov 128   ;;  %s877_s21 = smov 8  }
 0x222   :  { %607 = dma.vmem_to_hbm [thread:$0]  %s602_s4, 3200, %s1133_s5, [#allocation3], %s876_s20, %s876_s20, %s877_s21  }
 0x223   :  { %871 = dma.done.wait [#allocation3], 3200  }
 0x224   :  { %872 = vsyncadd [#allocation3], 4294964096 }
 0x225   :  { %611 = vsyncpa [#allocation3], 1 }

</bundles_post_ra>
